<compile_context>
chip_gen: v5e
topology: v5e:2x2
jax: 0.10.0
libtpu: 0.0.40
codegen_flags: <defaults>
</compile_context>

<pallas_src>
import functools

import jax
import jax.numpy as jnp
from jax.experimental import pallas as pl
from jax.experimental.pallas import tpu as pltpu

EPS = 1e-5
LANE = 128
SUBLANE = 8


def _round_up(n, m):
    return (n + m - 1) // m * m


def _pad_dim(n):
    """Pad a feature dim to lane width; bump odd >1 multiples of 128 to 256-multiples
    so the 2x256x256 MXU on v6e/v7x runs full-width (no-op for the 4x128 MXU on v5e)."""
    p = _round_up(n, LANE)
    if p > LANE and (p // LANE) % 2 == 1:
        p = _round_up(p, 2 * LANE)
    return p


def _pad2(a, rows, cols):
    if a.shape == (rows, cols):
        return a
    return jnp.pad(a, ((0, rows - a.shape[0]), (0, cols - a.shape[1])))


def _choose_tm(B, block_m):
    """Balanced batch tiles: padding < one sublane group; >= 2 tiles for non-trivial B
    so the 'parallel' batch axis can shard across both TensorCores on v7x."""
    min_tiles = 2 if B > 2 * SUBLANE else 1
    n_tiles = max(min_tiles, pl.cdiv(B, block_m))
    return _round_up(pl.cdiv(B, n_tiles), SUBLANE)


def downstream_kernel(x_ref, w1_ref, b1_ref, w2_ref, b2_ref, o_ref, *, compute_dtype):
    # BatchNorm1d (eval) is folded into w1/b1 on the host side; x arrives pre-cast.
    x = x_ref[...]                                                    # (TM, F_pad)

    # ---- fc1 (MXU, f32 accumulate) + fused epilogue: bias + ReLU + downcast ----
    h1 = jnp.dot(x, w1_ref[...], preferred_element_type=jnp.float32)
    h1 = jnp.maximum(h1 + b1_ref[...], 0.0).astype(compute_dtype)     # one VPU pass

    # ---- Dropout(0.3): identity in eval mode ----
    # TODO(synk): training-mode dropout (pltpu.prng_random_bits mask) not emitted here.

    # ---- fc2 + bias + ReLU ----
    h2 = jnp.dot(h1, w2_ref[...], preferred_element_type=jnp.float32)
    h2 = jnp.maximum(h2 + b2_ref[...], 0.0)

    o_ref[...] = h2.astype(o_ref.dtype)


def prepare_params(params, *, use_bf16=True):
    """One-time weight prep (call at model load, reuse across forwards):
    fold eval-mode BatchNorm1d into fc1, zero-pad to MXU-friendly dims, cast weights."""
    F_in, H = params["w1"].shape
    compute_dtype = jnp.bfloat16 if use_bf16 else jnp.float32

    # BN(x) = x*scale + shift  =>  W1' = scale*W1 ; b1' = b1 + shift@W1
    scale = params["gamma"] * jax.lax.rsqrt(params["running_var"] + EPS)   # (1, F)
    shift = params["beta"] - params["running_mean"] * scale                # (1, F)
    w1_f = params["w1"] * scale.reshape(F_in, 1)                           # (F, H)
    b1_f = params["b1"] + shift @ params["w1"]                             # (1, H)

    F_pad = _pad_dim(F_in)
    H_pad = _pad_dim(H)
    # Zero padding is exact: padded x cols hit zero w1 rows; padded hidden cols have
    # zero bias so ReLU keeps them 0; padded output cols/rows are sliced off.
    prepared = {
        "w1": _pad2(w1_f, F_pad, H_pad).astype(compute_dtype),
        "b1": _pad2(b1_f, 1, H_pad).astype(jnp.float32),
        "w2": _pad2(params["w2"], H_pad, H_pad).astype(compute_dtype),
        "b2": _pad2(params["b2"], 1, H_pad).astype(jnp.float32),
    }
    meta = dict(F=F_in, H=H, F_pad=F_pad, H_pad=H_pad, compute_dtype=compute_dtype)
    return prepared, meta


def downstream_forward(x, prepared, meta, *, block_m=512, bf16_out=None,
                       vmem_limit_bytes=48 * 1024 * 1024):
    """x: (B, input_size) f32. prepared/meta: output of prepare_params (cached)."""
    B, F_in = x.shape
    assert F_in == meta["F"]
    F_pad, H_pad, H = meta["F_pad"], meta["H_pad"], meta["H"]
    compute_dtype = meta["compute_dtype"]
    out_dtype = compute_dtype if (bf16_out is None and compute_dtype == jnp.bfloat16) \
        else (jnp.bfloat16 if bf16_out else jnp.float32)

    # ---- Batch tiling (balanced, >=2 tiles for dual-TC) + boundary cast of x ----
    TM = _choose_tm(B, block_m)
    B_pad = _round_up(B, TM)
    x_p = _pad2(x, B_pad, F_pad).astype(compute_dtype)   # halves x DMA bytes in bf16

    grid = (B_pad // TM,)
    w1_p, b1_p, w2_p, b2_p = prepared["w1"], prepared["b1"], prepared["w2"], prepared["b2"]

    cost = pl.CostEstimate(
        flops=2 * B_pad * (F_pad * H_pad + H_pad * H_pad),
        transcendentals=0,
        bytes_accessed=(x_p.size * x_p.dtype.itemsize
                        + w1_p.size * w1_p.dtype.itemsize
                        + w2_p.size * w2_p.dtype.itemsize
                        + (b1_p.size + b2_p.size) * 4
                        + B_pad * H_pad * jnp.dtype(out_dtype).itemsize),
    )

    # TODO(synk): for H_pad >= ~2048 (v7x, 64 MiB VMEM) add a K-grid axis over the fc2
    # contraction with a VMEM f32 accumulator instead of a resident (H_pad, H_pad) w2.
    out_p = pl.pallas_call(
        functools.partial(downstream_kernel, compute_dtype=compute_dtype),
        out_shape=jax.ShapeDtypeStruct((B_pad, H_pad), out_dtype),
        grid=grid,
        in_specs=[
            pl.BlockSpec((TM, F_pad), lambda i: (i, 0)),      # x tile (pipelined)
            pl.BlockSpec((F_pad, H_pad), lambda i: (0, 0)),   # w1 (VMEM-resident)
            pl.BlockSpec((1, H_pad), lambda i: (0, 0)),       # b1
            pl.BlockSpec((H_pad, H_pad), lambda i: (0, 0)),   # w2 (VMEM-resident)
            pl.BlockSpec((1, H_pad), lambda i: (0, 0)),       # b2
        ],
        out_specs=pl.BlockSpec((TM, H_pad), lambda i: (i, 0)),
        compiler_params=pltpu.CompilerParams(
            dimension_semantics=("parallel",),   # batch tiles shard across TCs (v7x)
            vmem_limit_bytes=vmem_limit_bytes,   # 48 MiB safe on v7x; raise on v5e/v6e
        ),
        cost_estimate=cost,
    )(x_p, w1_p, b1_p, w2_p, b2_p)

    if B_pad == B and H_pad == H:
        return out_p
    return out_p[:B, :H]


def downstream_model(x, params, *, use_bf16=True, block_m=512, bf16_out=None):
    """Convenience one-shot path (prep + forward). Prefer caching prepare_params()."""
    prepared, meta = prepare_params(params, use_bf16=use_bf16)
    return downstream_forward(x, prepared, meta, block_m=block_m, bf16_out=bf16_out)


def init_params(key, input_size, hidden_size):
    ks = jax.random.split(key, 6)
    # BatchNorm1d: gamma=1, beta=0, nontrivial deterministic running stats.
    gamma = jnp.ones((1, input_size), jnp.float32)
    beta = jnp.zeros((1, input_size), jnp.float32)
    running_mean = 0.1 * jax.random.normal(ks[0], (1, input_size), jnp.float32)
    running_var = 1.0 + 0.1 * jax.random.uniform(ks[1], (1, input_size), jnp.float32)
    # Linear layers stored as (in, out) == PyTorch weight.T, uniform(-1/sqrt(in), 1/sqrt(in)).
    lim1 = 1.0 / jnp.sqrt(input_size)
    w1 = jax.random.uniform(ks[2], (input_size, hidden_size), jnp.float32, -lim1, lim1)
    b1 = jax.random.uniform(ks[3], (1, hidden_size), jnp.float32, -lim1, lim1)
    lim2 = 1.0 / jnp.sqrt(hidden_size)
    w2 = jax.random.uniform(ks[4], (hidden_size, hidden_size), jnp.float32, -lim2, lim2)
    b2 = jax.random.uniform(ks[5], (1, hidden_size), jnp.float32, -lim2, lim2)
    return dict(gamma=gamma, beta=beta, running_mean=running_mean, running_var=running_var,
                w1=w1, b1=b1, w2=w2, b2=b2)


def reference(x, p):
    xn = (x - p["running_mean"]) * jax.lax.rsqrt(p["running_var"] + EPS) * p["gamma"] + p["beta"]
    h1 = jnp.maximum(xn @ p["w1"] + p["b1"], 0.0)
    h2 = jnp.maximum(h1 @ p["w2"] + p["b2"], 0.0)
    return h2


if __name__ == "__main__":
    B, INPUT_SIZE, HIDDEN_SIZE = 8, 32, 32
    key = jax.random.PRNGKey(0)
    kx, kp = jax.random.split(key)
    x = jax.random.normal(kx, (B, INPUT_SIZE), jnp.float32)
    params = init_params(kp, INPUT_SIZE, HIDDEN_SIZE)

    ref = reference(x, params)

    # f32 matmul operands, f32 output: tight check.
    prep_f32, meta_f32 = prepare_params(params, use_bf16=False)
    out_f32 = jax.block_until_ready(downstream_forward(x, prep_f32, meta_f32))
    assert out_f32.shape == (B, HIDDEN_SIZE)
    assert out_f32.dtype == jnp.float32
    assert jnp.allclose(out_f32, ref, atol=1e-5, rtol=1e-5), "f32 mismatch vs reference"

    # bf16 matmul operands + bf16 output (v6e/v7x fast path), f32 accumulation: looser check.
    prep_bf16, meta_bf16 = prepare_params(params, use_bf16=True)
    out_bf16 = jax.block_until_ready(downstream_forward(x, prep_bf16, meta_bf16))
    assert out_bf16.shape == (B, HIDDEN_SIZE)
    assert jnp.allclose(out_bf16.astype(jnp.float32), ref, atol=5e-2, rtol=5e-2), \
        "bf16 mismatch vs reference"

    print("KERNEL_OK")
</pallas_src>

<mosaic_0001>
module attributes {stable_mosaic.version = 11 : i64} {
  func.func @downstream_kernel(%arg0: i32, %arg1: memref<8x128xf32, #tpu.memory_space<vmem>>, %arg2: memref<128x128xf32, #tpu.memory_space<vmem>>, %arg3: memref<1x128xf32, #tpu.memory_space<vmem>>, %arg4: memref<128x128xf32, #tpu.memory_space<vmem>>, %arg5: memref<1x128xf32, #tpu.memory_space<vmem>>, %arg6: memref<8x128xf32, #tpu.memory_space<vmem>>) attributes {dimension_semantics = [#tpu.dimension_semantics<parallel>], iteration_bounds = array<i64: 1>, scalar_prefetch = 0 : i64, scratch_operands = 0 : i64, tpu.core_type = #tpu.core_type<tc>, window_params = [{transform_indices = @transform_0, window_bounds = array<i64: 8, 128>}, {pipeline_mode = #tpu.pipeline_mode<synchronous>, transform_indices = @transform_1, window_bounds = array<i64: 128, 128>}, {pipeline_mode = #tpu.pipeline_mode<synchronous>, transform_indices = @transform_2, window_bounds = array<i64: 1, 128>}, {pipeline_mode = #tpu.pipeline_mode<synchronous>, transform_indices = @transform_3, window_bounds = array<i64: 128, 128>}, {pipeline_mode = #tpu.pipeline_mode<synchronous>, transform_indices = @transform_4, window_bounds = array<i64: 1, 128>}, {transform_indices = @transform_5, window_bounds = array<i64: 8, 128>}]} {
    %c0 = arith.constant 0 : index
    %c0_0 = arith.constant 0 : index
    %0 = vector.load %arg1[%c0, %c0_0] : memref<8x128xf32, #tpu.memory_space<vmem>>, vector<8x128xf32>
    %c0_1 = arith.constant 0 : index
    %c0_2 = arith.constant 0 : index
    %1 = vector.load %arg2[%c0_1, %c0_2] : memref<128x128xf32, #tpu.memory_space<vmem>>, vector<128x128xf32>
    %cst = arith.constant dense<0.000000e+00> : vector<8x128xf32>
    %2 = tpu.matmul %0, %1, %cst {dimension_numbers = #tpu.dot_dimension_numbers<[1], [0], [0], [1], [0, 0, 1, 1], [], []>} : vector<8x128xf32>, vector<128x128xf32>, vector<8x128xf32> -> vector<8x128xf32>
    %c0_3 = arith.constant 0 : index
    %c0_4 = arith.constant 0 : index
    %3 = vector.load %arg3[%c0_3, %c0_4] : memref<1x128xf32, #tpu.memory_space<vmem>>, vector<1x128xf32>
    %4 = vector.broadcast %3 : vector<1x128xf32> to vector<8x128xf32>
    %5 = arith.addf %2, %4 : vector<8x128xf32>
    %cst_5 = arith.constant 0.000000e+00 : f32
    %6 = vector.broadcast %cst_5 : f32 to vector<8x128xf32>
    %7 = arith.maximumf %5, %6 : vector<8x128xf32>
    %c0_6 = arith.constant 0 : index
    %c0_7 = arith.constant 0 : index
    %8 = vector.load %arg4[%c0_6, %c0_7] : memref<128x128xf32, #tpu.memory_space<vmem>>, vector<128x128xf32>
    %cst_8 = arith.constant dense<0.000000e+00> : vector<8x128xf32>
    %9 = tpu.matmul %7, %8, %cst_8 {dimension_numbers = #tpu.dot_dimension_numbers<[1], [0], [0], [1], [0, 0, 1, 1], [], []>} : vector<8x128xf32>, vector<128x128xf32>, vector<8x128xf32> -> vector<8x128xf32>
    %c0_9 = arith.constant 0 : index
    %c0_10 = arith.constant 0 : index
    %10 = vector.load %arg5[%c0_9, %c0_10] : memref<1x128xf32, #tpu.memory_space<vmem>>, vector<1x128xf32>
    %11 = vector.broadcast %10 : vector<1x128xf32> to vector<8x128xf32>
    %12 = arith.addf %9, %11 : vector<8x128xf32>
    %cst_11 = arith.constant 0.000000e+00 : f32
    %13 = vector.broadcast %cst_11 : f32 to vector<8x128xf32>
    %14 = arith.maximumf %12, %13 : vector<8x128xf32>
    %c0_12 = arith.constant 0 : index
    %c0_13 = arith.constant 0 : index
    %15 = vector.load %arg6[%c0_12, %c0_13] : memref<8x128xf32, #tpu.memory_space<vmem>>, vector<8x128xf32>
    tpu.vector_store %arg6[%c0_12, %c0_13], %14 {strides = array<i32>} : memref<8x128xf32, #tpu.memory_space<vmem>>, vector<8x128xf32>,
    return
  }
  func.func @transform_0(%arg0: i32) -> (i32, i32) {
    %c0_i32 = arith.constant 0 : i32
    %c0_i32_0 = arith.constant 0 : i32
    return %arg0, %c0_i32 : i32, i32
  }
  func.func @transform_1(%arg0: i32) -> (i32, i32) {
    %c0_i32 = arith.constant 0 : i32
    %c0_i32_0 = arith.constant 0 : i32
    %c0_i32_1 = arith.constant 0 : i32
    return %c0_i32, %c0_i32_0 : i32, i32
  }
  func.func @transform_2(%arg0: i32) -> (i32, i32) {
    %c0_i32 = arith.constant 0 : i32
    %c0_i32_0 = arith.constant 0 : i32
    %c0_i32_1 = arith.constant 0 : i32
    return %c0_i32, %c0_i32_0 : i32, i32
  }
  func.func @transform_3(%arg0: i32) -> (i32, i32) {
    %c0_i32 = arith.constant 0 : i32
    %c0_i32_0 = arith.constant 0 : i32
    %c0_i32_1 = arith.constant 0 : i32
    return %c0_i32, %c0_i32_0 : i32, i32
  }
  func.func @transform_4(%arg0: i32) -> (i32, i32) {
    %c0_i32 = arith.constant 0 : i32
    %c0_i32_0 = arith.constant 0 : i32
    %c0_i32_1 = arith.constant 0 : i32
    return %c0_i32, %c0_i32_0 : i32, i32
  }
  func.func @transform_5(%arg0: i32) -> (i32, i32) {
    %c0_i32 = arith.constant 0 : i32
    %c0_i32_0 = arith.constant 0 : i32
    return %arg0, %c0_i32 : i32, i32
  }
}

</mosaic_0001>

<bundles_post_ra>
// kernel: tpu_custom_call.1
= control target key start
LH: loop header
LB: loop body
LE: loop exit
PB: predicated region body
PF: predicated region fallthrough
CT: control target
= control target key end

     0   :  { %10 = vsyncpa [#allocation3], 0  ;;  %s332_s0 = inlined_call_operand.hbm [shape: f32[8,128], index: 0, kind: input, shape index: {}]   ;;  %s333_s1 = inlined_call_operand.hbm [shape: f32[128,128], index: 1, kind: input, shape index: {}]   ;;  %s334_s2 = inlined_call_operand.vmem [shape: f32[1,128], index: 2, kind: input, shape index: {}]   ;;  %s335_s3 = inlined_call_operand.hbm [shape: f32[128,128], index: 3, kind: input, shape index: {}]   ;;  %s336_s4 = inlined_call_operand.vmem [shape: f32[1,128], index: 4, kind: input, shape index: {}]   ;;  %s337_s5 = inlined_call_operand.hbm [shape: f32[8,128], index: 5, kind: output, shape index: {}]  }
   0x1   :  { %11 = vsyncpa [#allocation6], 0  ;;  %s28_s20 = sshll.u32 %s333_s1, 4  ;;  %s29_s20 = int_to_ptr.hbm [resolvable:$true] %s28_s20 }
   0x2   :  { %12 = vsyncpa [#allocation4], 0  ;;  %s278_s21 = smov [#allocation5]   ;;  %s18_s25 = sshll.u32 %s332_s0, 4  ;;  %s19_s25 = int_to_ptr.hbm [resolvable:$true] %s18_s25 }
   0x3   :  { %s30_s22 = sshll.u32 %s278_s21, 4  ;;  %s279_s26 = smov 128   ;;  %s31_s22 = int_to_ptr.vmem [resolvable:$true] %s30_s22 }
   0x4   :  { %s280_s27 = smov 8   ;;  %s281_s28 = smov [#allocation2]  }
   0x5   :  { %36 = dma.hbm_to_vmem [thread:$0]  %s29_s20, 2048, %s31_s22, [#allocation6], %s279_s26, %s279_s26, %s280_s27  }
   0x6   :  { %s20_s29 = sshll.u32 %s281_s28, 4  ;;  %s43_s7 = sshll.u32 %s335_s3, 4  ;;  %s21_s29 = int_to_ptr.vmem [resolvable:$true] %s20_s29  ;;  %s44_s7 = int_to_ptr.hbm [resolvable:$true] %s43_s7 }
   0x7   :  { %23 = dma.hbm_to_vmem [thread:$0]  %s19_s25, 128, %s21_s29, [#allocation3]  }
   0x8   :  { %s282_s1 = smov [#allocation7]  }
   0x9   :  { %s45_s8 = sshll.u32 %s282_s1, 4  ;;  %s46_s8 = int_to_ptr.vmem [resolvable:$true] %s45_s8 }
   0xa   :  { %51 = dma.hbm_to_vmem [thread:$0]  %s44_s7, 2048, %s46_s8, [#allocation6], %s279_s26, %s279_s26, %s280_s27  }
   0xb   :  { %272 = dma.done.wait [#allocation3], 128  }
   0xc   :  { %273 = vsyncadd [#allocation3], 4294967168 }
   0xd   :  { %274 = dma.done.wait [#allocation6], 4096  }
   0xe   :  { %275 = vsyncadd [#allocation6], 4294963200  ;;  %v82_v0 = vld [vmem:[#allocation5 + $0x78] sm:$0xff]  ;;  %v81_v1 = vld [vmem:[#allocation5 + $0x70] sm:$0xff]  ;;  %s283_s11 = smov [#allocation8]   ;;  %s157_s15 = sshll.u32 %s337_s5, 4  ;;  %s158_s15 = int_to_ptr.hbm [resolvable:$true] %s157_s15 }
   0xf   :  { %87 = vmatpush.msra.mxu0 %v82_v0  ;;  %v80_v2 = vld [vmem:[#allocation5 + $0x68] sm:$0xff]  ;;  %v79_v3 = vld [vmem:[#allocation5 + $0x60] sm:$0xff]  ;;  %v123_v4 = vld [vmem:[#allocation7 + $0x78] sm:$0xff]  ;;  %s155_s12 = sshll.u32 %s283_s11, 4  ;;  %s156_s12 = int_to_ptr.vmem [resolvable:$true] %s155_s12 }
  0x10   :  { %v78_v5 = vld [vmem:[#allocation5 + $0x58] sm:$0xff]  ;;  %128 = vmatpush.msra.mxu1 %v123_v4  ;;  %v122_v6 = vld [vmem:[#allocation7 + $0x70] sm:$0xff]  ;;  %v121_v7 = vld [vmem:[#allocation7 + $0x68] sm:$0xff] }
  0x11   :  { %88 = vmatpush.msra.mxu0 %v81_v1  ;;  %v77_v8 = vld [vmem:[#allocation5 + $0x50] sm:$0xff]  ;;  %v120_v9 = vld [vmem:[#allocation7 + $0x60] sm:$0xff]  ;;  %v76_v10 = vld [vmem:[#allocation5 + $0x48] sm:$0xff] }
  0x12   :  { %129 = vmatpush.msra.mxu1 %v122_v6  ;;  %v119_v11 = vld [vmem:[#allocation7 + $0x58] sm:$0xff]  ;;  %v75_v12 = vld [vmem:[#allocation5 + $0x40] sm:$0xff]  ;;  %v118_v13 = vld [vmem:[#allocation7 + $0x50] sm:$0xff] }
  0x13   :  { %89 = vmatpush.msra.mxu0 %v80_v2  ;;  %v74_v14 = vld [vmem:[#allocation5 + $0x38] sm:$0xff]  ;;  %v117_v15 = vld [vmem:[#allocation7 + $0x48] sm:$0xff]  ;;  %v73_v16 = vld [vmem:[#allocation5 + $0x30] sm:$0xff] }
  0x14   :  { %130 = vmatpush.msra.mxu1 %v121_v7  ;;  %v116_v17 = vld [vmem:[#allocation7 + $0x40] sm:$0xff]  ;;  %v72_v18 = vld [vmem:[#allocation5 + $0x28] sm:$0xff]  ;;  %v115_v19 = vld [vmem:[#allocation7 + $0x38] sm:$0xff] }
  0x15   :  { %90 = vmatpush.msra.mxu0 %v79_v3  ;;  %v71_v20 = vld [vmem:[#allocation5 + $0x20] sm:$0xff]  ;;  %v114_v21 = vld [vmem:[#allocation7 + $0x30] sm:$0xff]  ;;  %v70_v22 = vld [vmem:[#allocation5 + $0x18] sm:$0xff] }
  0x16   :  { %131 = vmatpush.msra.mxu1 %v120_v9  ;;  %v113_v23 = vld [vmem:[#allocation7 + $0x28] sm:$0xff]  ;;  %v69_v24 = vld [vmem:[#allocation5 + $0x10] sm:$0xff]  ;;  %v112_v25 = vld [vmem:[#allocation7 + $0x20] sm:$0xff] }
  0x17   :  { %91 = vmatpush.msra.mxu0 %v78_v5  ;;  %v68_v26 = vld [vmem:[#allocation5 + $0x8] sm:$0xff]  ;;  %v111_v27 = vld [vmem:[#allocation7 + $0x18] sm:$0xff]  ;;  %v67_v28 = vld [vmem:[#allocation5] sm:$0xff] }
  0x18   :  { %132 = vmatpush.msra.mxu1 %v119_v11  ;;  %v66_v29 = vld [vmem:[#allocation2] sm:$0xff]  ;;  %v110_v30 = vld [vmem:[#allocation7 + $0x10] sm:$0xff]  ;;  %v109_v31 = vld [vmem:[#allocation7 + $0x8] sm:$0xff] }
  0x19   :  { %92 = vmatpush.msra.mxu0 %v77_v8  ;;  %v108_v32 = vld [vmem:[#allocation7] sm:$0xff]  ;;  %v174_v33 = vld [vmem:[%s334_s2] ss:$0 sm:$0xff] }
  0x1a   :  { %133 = vmatpush.msra.mxu1 %v118_v13  ;;  %v175_v37 = vld [vmem:[%s336_s4] ss:$0 sm:$0xff] }
  0x1b   :  { %93 = vmatpush.msra.mxu0 %v76_v10 }
  0x1c   :  { %134 = vmatpush.msra.mxu1 %v117_v15 }
  0x1d   :  { %94 = vmatpush.msra.mxu0 %v75_v12 }
  0x1e   :  { %135 = vmatpush.msra.mxu1 %v116_v17 }
  0x1f   :  { %95 = vmatpush.msra.mxu0 %v74_v14 }
  0x20   :  { %136 = vmatpush.msra.mxu1 %v115_v19 }
  0x21   :  { %96 = vmatpush.msra.mxu0 %v73_v16 }
  0x22   :  { %137 = vmatpush.msra.mxu1 %v114_v21 }
  0x23   :  { %97 = vmatpush.msra.mxu0 %v72_v18 }
  0x24   :  { %138 = vmatpush.msra.mxu1 %v113_v23 }
  0x25   :  { %98 = vmatpush.msra.mxu0 %v71_v20 }
  0x26   :  { %139 = vmatpush.msra.mxu1 %v112_v25 }
  0x27   :  { %99 = vmatpush.msra.mxu0 %v70_v22 }
  0x28   :  { %140 = vmatpush.msra.mxu1 %v111_v27 }
  0x29   :  { %100 = vmatpush.msra.mxu0 %v69_v24 }
  0x2a   :  { %141 = vmatpush.msra.mxu1 %v110_v30 }
  0x2b   :  { %101 = vmatpush.msra.mxu0 %v68_v26 }
  0x2c   :  { %142 = vmatpush.msra.mxu1 %v109_v31 }
  0x2d   :  { %102 = vmatpush.msra.mxu0 %v67_v28 }
  0x2e   :  { %103 = vmatmul.f32.vlgmr.msra.gmra.mxu0 %v66_v29  ;;  %143 = vmatpush.msra.mxu1 %v108_v32 }
  0xab   :  { %v104_v34 = vpop.f32.mrf.mxu0 }
  0xac   :  { %v105_v35 = vadd.f32 %v174_v33, %v104_v34 }
  0xae   :  { %v107_v36 = vmax.f32 %v105_v35, 0.0 }
  0xb0   :  { %144 = vmatmul.f32.vlgmr.msra.gmra.mxu1 %v107_v36 }
 0x12d   :  { %v145_v38 = vpop.f32.mrf.mxu1 }
 0x12e   :  { %v146_v39 = vadd.f32 %v175_v37, %v145_v38 }
 0x130   :  { %v148_v40 = vmax.f32 %v146_v39, 0.0 }
 0x132   :  { %149 = vst [vmem:[#allocation8] sm:$0xff] %v148_v40 }
 0x133   :  { %160 = dma.vmem_to_hbm [thread:$0]  %s156_s12, 128, %s158_s15, [#allocation4]  }
 0x134   :  { %276 = dma.done.wait [#allocation4], 128  }
 0x135   :  { %277 = vsyncadd [#allocation4], 4294967168 }
 0x136   :  { %165 = vsyncpa [#allocation3], 1 }
 0x137   :  { %166 = vsyncpa [#allocation6], 1 }
 0x138   :  { %167 = vsyncpa [#allocation4], 1 }

</bundles_post_ra>
